<compile_context>
chip_gen: v6e
topology: v6e:2x2x1
jax: 0.10.0
libtpu: 0.0.40
codegen_flags: <defaults>
</compile_context>

<pallas_src>
import jax
import jax.numpy as jnp
from jax import lax
from jax.experimental import pallas as pl
from jax.experimental.pallas import tpu as pltpu

EPS = 1e-5
NEG_SLOPE = 0.2


# --------------------------------------------------------------------------
# Kernels
# --------------------------------------------------------------------------
def _dgl_cond_kernel(x_ref, w1_ref, g_ref, b_ref, w2_ref, b2_ref,
                     out_ref, xpad_ref, logit_ref):
    """Fused conditional head, gridded over Cout tiles.

    x_ref   : (N, H, W, Cin)   concatenated [h, c] input, NHWC, f32 (resident)
    w1_ref  : (9, Cin, tn)     conv3x3 weight tile, tap-major, bf16 (streamed)
    g_ref   : (1, tn)          BN gamma tile
    b_ref   : (1, tn)          BN beta tile
    w2_ref  : (H*W, tn)        4x4/stride-4 conv weight tile
    b2_ref  : (1, 1)           final conv bias
    out_ref : (N, 1)           sigmoid output (written at the last grid step)
    xpad_ref: VMEM scratch (N, H+2, W+2, Cin) f32 zero-halo (built once)
    logit_ref: VMEM scratch (N, 1) f32 logit accumulator across Cout tiles
    """
    N, H, W, Cin = x_ref.shape
    NHW = N * H * W
    tn = g_ref.shape[1]
    j = pl.program_id(0)

    # ---- one-time setup (first Cout block): halo-padded input + logit acc ----
    @pl.when(j == 0)
    def _():
        # Only the 1-wide ring strictly needs zeroing; a full zero fill is a
        # one-time store of N*36*Cin floats and keeps the lowering trivial.
        xpad_ref[...] = jnp.zeros(xpad_ref.shape, xpad_ref.dtype)
        xpad_ref[:, 1:H + 1, 1:W + 1, :] = x_ref[...]
        logit_ref[...] = jnp.zeros(logit_ref.shape, logit_ref.dtype)

    # ---- conv3x3 for this Cout tile: 9 accumulating bf16 MXU matmuls ---------
    # (no materialized (NHW, 9*Cin) im2col, no lane-axis concat)
    def tap(dh, dw):
        t = xpad_ref[:, dh:dh + H, dw:dw + W, :].reshape(NHW, Cin)
        return t.astype(jnp.bfloat16)

    acc = jnp.dot(tap(0, 0), w1_ref[0], preferred_element_type=jnp.float32)
    for t_idx in range(1, 9):
        dh, dw = t_idx // 3, t_idx % 3
        acc = acc + jnp.dot(tap(dh, dw), w1_ref[t_idx],
                            preferred_element_type=jnp.float32)      # (NHW, tn)

    # ---- BatchNorm2d (training-mode batch stats, biased variance) ------------
    # Per-output-channel stats => exact under Cout tiling.  Centered two-pass
    # variance avoids the E[x^2]-mean^2 cancellation issue.
    mean = jnp.mean(acc, axis=0, keepdims=True)                       # (1, tn)
    cen = acc - mean
    var = jnp.mean(cen * cen, axis=0, keepdims=True)
    y = cen * lax.rsqrt(var + EPS) * g_ref[...] + b_ref[...]
    y = jnp.maximum(y, NEG_SLOPE * y)                                 # LeakyReLU(0.2)

    # ---- 4x4 / stride-4 conv: this tile's contribution to the logit ----------
    y3 = y.reshape(N, H * W, tn)                                      # split-leading
    s = jnp.sum(y3 * w2_ref[...], axis=1)                             # (N, tn)
    contrib = jnp.dot(s, jnp.ones((tn, 1), jnp.float32),
                      preferred_element_type=jnp.float32)             # (N, 1) on MXU
    logit_ref[...] += contrib

    # ---- bias + sigmoid once every Cout tile has been accumulated ------------
    @pl.when(j == pl.num_programs(0) - 1)
    def _():
        z = logit_ref[...] + b2_ref[...]
        out_ref[...] = (1.0 / (1.0 + jnp.exp(-z))).astype(out_ref.dtype)


def _dgl_uncond_kernel(h_ref, w2_ref, b2_ref, out_ref):
    """Unconditional head: 4x4/stride-4 conv + bias + sigmoid (tiny)."""
    N, HW, C = h_ref.shape
    s = jnp.sum(h_ref[...] * w2_ref[...], axis=1)                     # (N, C)
    logit = jnp.dot(s, jnp.ones((C, 1), jnp.float32),
                    preferred_element_type=jnp.float32) + b2_ref[...]
    out_ref[...] = (1.0 / (1.0 + jnp.exp(-logit))).astype(out_ref.dtype)


# --------------------------------------------------------------------------
# Wrappers
# --------------------------------------------------------------------------
def _cond_forward(params, h_nchw, c_code):
    N, Ch, H, W = h_nchw.shape
    Ce = c_code.shape[-1]
    Cin = Ch + Ce
    Cout = params["g1"].shape[-1]

    # Cheap one-off layout prep (one small fused XLA op): NCHW -> NHWC, spatial
    # broadcast of c, channel concat.  All heavy compute is inside pallas_call.
    h = jnp.transpose(h_nchw, (0, 2, 3, 1)).astype(jnp.float32)
    c = jnp.broadcast_to(c_code.astype(jnp.float32)[:, None, None, :],
                         (N, H, W, Ce))
    x = jnp.concatenate([h, c], axis=-1)                              # (N,H,W,Cin)

    # Conv weights: tap-major (9, Cin, Cout), bf16 for the MXU fast path.
    w1 = params["w1"].reshape(9, Cin, Cout).astype(jnp.bfloat16)
    w2 = params["w2"].reshape(H * W, Cout).astype(jnp.float32)
    g1 = params["g1"].astype(jnp.float32)
    b1 = params["b1"].astype(jnp.float32)
    b2 = params["b2"].astype(jnp.float32)

    tn = 128 if Cout % 128 == 0 else Cout       # Cout tile streamed per grid step
    nblk = Cout // tn

    # Explicit scoped-VMEM budget with headroom for double buffering and the
    # in-kernel temporaries (v5e default scoped limit is 16 MiB; v7x physical
    # VMEM is 64 MiB/TC, so cap there).
    vmem_est = (4 * N * (H + 2) * (W + 2) * Cin        # halo scratch (f32)
                + 2 * 4 * N * H * W * Cin              # x, double buffered
                + 2 * 2 * 9 * Cin * tn                 # w1 tile (bf16, dbl buf)
                + 2 * 4 * H * W * tn                   # w2 tile
                + 8 * 4 * N * H * W * tn               # acc / BN / act temporaries
                + 6 * N * H * W * Cin)                 # per-tap f32+bf16 staging
    vmem_limit = int(min(64 * 1024 * 1024,
                         max(32 * 1024 * 1024, int(1.5 * vmem_est))))

    flops = int(2 * N * H * W * 9 * Cin * Cout         # conv3x3
                + 12 * N * H * W * Cout)               # BN + LeakyReLU + conv4x4
    bytes_acc = int(4 * x.size + 2 * w1.size
                    + 4 * (w2.size + g1.size + b1.size + b2.size) + 4 * N)

    out = pl.pallas_call(
        _dgl_cond_kernel,
        out_shape=jax.ShapeDtypeStruct((N, 1), jnp.float32),
        grid=(nblk,),
        in_specs=[
            pl.BlockSpec((N, H, W, Cin), lambda j: (0, 0, 0, 0)),   # x (resident)
            pl.BlockSpec((9, Cin, tn), lambda j: (0, 0, j)),        # w1 (streamed)
            pl.BlockSpec((1, tn), lambda j: (0, j)),                # gamma
            pl.BlockSpec((1, tn), lambda j: (0, j)),                # beta
            pl.BlockSpec((H * W, tn), lambda j: (0, j)),            # w2
            pl.BlockSpec((1, 1), lambda j: (0, 0)),                 # bias
        ],
        out_specs=pl.BlockSpec((N, 1), lambda j: (0, 0)),
        scratch_shapes=[pltpu.VMEM((N, H + 2, W + 2, Cin), jnp.float32),
                        pltpu.VMEM((N, 1), jnp.float32)],
        compiler_params=pltpu.CompilerParams(
            dimension_semantics=("arbitrary",),
            vmem_limit_bytes=vmem_limit),
        cost_estimate=pl.CostEstimate(flops=flops,
                                      transcendentals=int(N + Cout),
                                      bytes_accessed=bytes_acc),
    )(x, w1, g1, b1, w2, b2)
    return out.reshape(-1)


def _uncond_forward(params, h_nchw):
    N, C, H, W = h_nchw.shape
    h = jnp.transpose(h_nchw, (0, 2, 3, 1)).astype(jnp.float32).reshape(N, H * W, C)
    w2 = params["w2"].reshape(H * W, C).astype(jnp.float32)
    b2 = params["b2"].astype(jnp.float32)

    vmem = pl.BlockSpec(memory_space=pltpu.MemorySpace.VMEM)
    out = pl.pallas_call(
        _dgl_uncond_kernel,
        out_shape=jax.ShapeDtypeStruct((N, 1), jnp.float32),
        in_specs=[vmem, vmem, vmem],
        out_specs=vmem,
        cost_estimate=pl.CostEstimate(
            flops=int(2 * N * H * W * C),
            transcendentals=int(N),
            bytes_accessed=int(4 * (h.size + w2.size + 1 + N))),
    )(h, w2, b2)
    return out.reshape(-1)


_cond_jit = jax.jit(_cond_forward)
_uncond_jit = jax.jit(_uncond_forward)


def d_get_logits_forward(params, h_code, c_code=None, bcondition=True):
    """Matches D_GET_LOGITS.forward: returns a flat (N,) vector of sigmoid outputs."""
    if bcondition and c_code is not None:
        return _cond_jit(params, h_code, c_code)
    return _uncond_jit(params, h_code)


def init_params(key, ndf, nef):
    C = ndf * 8
    Cin = C + nef
    k1, k2, k3 = jax.random.split(key, 3)
    return {
        # conv3x3 weight in HWIO (3,3,Cin,Cout); BatchNorm2d defaults gamma=1, beta=0.
        "w1": 0.05 * jax.random.normal(k1, (3, 3, Cin, C), jnp.float32),
        "g1": jnp.ones((1, C), jnp.float32),
        "b1": jnp.zeros((1, C), jnp.float32),
        # 4x4/stride-4 conv weight in HWIO (4,4,C,1) + bias (Conv2d default bias=True).
        "w2": 0.05 * jax.random.normal(k2, (4, 4, C, 1), jnp.float32),
        "b2": 0.1 * jax.random.normal(k3, (1, 1), jnp.float32),
    }


# --------------------------------------------------------------------------
# Pure-JAX references for correctness checks
# --------------------------------------------------------------------------
def _reference_cond(params, h_nchw, c_code):
    x = jnp.transpose(h_nchw, (0, 2, 3, 1)).astype(jnp.float32)
    N, H, W, Ch = x.shape
    Ce = c_code.shape[-1]
    c = jnp.broadcast_to(c_code.reshape(N, 1, 1, Ce), (N, H, W, Ce))
    hc = jnp.concatenate([x, c], axis=-1)
    y = lax.conv_general_dilated(hc, params["w1"], (1, 1), "SAME",
                                 dimension_numbers=("NHWC", "HWIO", "NHWC"))
    mean = jnp.mean(y, axis=(0, 1, 2), keepdims=True)
    var = jnp.mean((y - mean) ** 2, axis=(0, 1, 2), keepdims=True)
    y = (y - mean) * lax.rsqrt(var + EPS)
    y = y * params["g1"].reshape(1, 1, 1, -1) + params["b1"].reshape(1, 1, 1, -1)
    y = jnp.where(y > 0, y, NEG_SLOPE * y)
    z = lax.conv_general_dilated(y, params["w2"], (4, 4), "VALID",
                                 dimension_numbers=("NHWC", "HWIO", "NHWC"))
    return jax.nn.sigmoid(z.reshape(-1) + params["b2"].reshape(()))


def _reference_uncond(params, h_nchw):
    x = jnp.transpose(h_nchw, (0, 2, 3, 1)).astype(jnp.float32)
    z = lax.conv_general_dilated(x, params["w2"], (4, 4), "VALID",
                                 dimension_numbers=("NHWC", "HWIO", "NHWC"))
    return jax.nn.sigmoid(z.reshape(-1) + params["b2"].reshape(()))


# --------------------------------------------------------------------------
if __name__ == "__main__":
    key = jax.random.PRNGKey(0)
    kh, kc, kp, kg, kb, kh2, kc2, kp2 = jax.random.split(key, 8)

    # ---- config 1: toy size (single Cout tile) ------------------------------
    N, ndf, nef = 2, 4, 8                    # Cout = 32, Cin = 40, 4x4 spatial
    h_code = jax.random.normal(kh, (N, ndf * 8, 4, 4), jnp.float32)
    c_code = jax.random.normal(kc, (N, nef), jnp.float32)
    params = init_params(kp, ndf, nef)
    # Perturb the BN affine params away from the (identity) PyTorch init so the
    # gamma/beta path is actually exercised.
    params["g1"] = params["g1"] + 0.1 * jax.random.normal(kg, params["g1"].shape)
    params["b1"] = params["b1"] + 0.1 * jax.random.normal(kb, params["b1"].shape)

    out_c = jax.block_until_ready(
        d_get_logits_forward(params, h_code, c_code, bcondition=True))
    ref_c = _reference_cond(params, h_code, c_code)
    assert out_c.shape == (N,)
    # bf16 MXU operands => loosened tolerance vs the f32 reference.
    assert jnp.allclose(out_c, ref_c, atol=1e-2, rtol=1e-2), "conditional mismatch"

    out_u = jax.block_until_ready(
        d_get_logits_forward(params, h_code, bcondition=False))
    ref_u = _reference_uncond(params, h_code)
    assert out_u.shape == (N,)
    assert jnp.allclose(out_u, ref_u, atol=1e-4, rtol=1e-4), "unconditional mismatch"

    # ---- config 2: exercises the multi-tile Cout grid (tn=128, 2 blocks) -----
    N2, ndf2, nef2 = 4, 32, 16               # Cout = 256, Cin = 272
    h2 = jax.random.normal(kh2, (N2, ndf2 * 8, 4, 4), jnp.float32)
    c2 = jax.random.normal(kc2, (N2, nef2), jnp.float32)
    p2 = init_params(kp2, ndf2, nef2)
    out2 = jax.block_until_ready(d_get_logits_forward(p2, h2, c2, bcondition=True))
    ref2 = _reference_cond(p2, h2, c2)
    assert out2.shape == (N2,)
    assert jnp.allclose(out2, ref2, atol=1e-2, rtol=1e-2), "gridded conditional mismatch"

    print("KERNEL_OK")
</pallas_src>

<mosaic_0001>
module attributes {stable_mosaic.version = 11 : i64} {
  func.func @_dgl_cond_kernel(%arg0: i32, %arg1: memref<2x4x4x40xf32, #tpu.memory_space<vmem>>, %arg2: memref<9x40x32xbf16, #tpu.memory_space<vmem>>, %arg3: memref<1x32xf32, #tpu.memory_space<vmem>>, %arg4: memref<1x32xf32, #tpu.memory_space<vmem>>, %arg5: memref<16x32xf32, #tpu.memory_space<vmem>>, %arg6: memref<1x1xf32, #tpu.memory_space<vmem>>, %arg7: memref<2x1xf32, #tpu.memory_space<vmem>>, %arg8: memref<2x6x6x40xf32, #tpu.memory_space<vmem>>, %arg9: memref<2x1xf32, #tpu.memory_space<vmem>>) attributes {dimension_semantics = [#tpu.dimension_semantics<arbitrary>], iteration_bounds = array<i64: 1>, scalar_prefetch = 0 : i64, scratch_operands = 2 : i64, tpu.core_type = #tpu.core_type<tc>, window_params = [{pipeline_mode = #tpu.pipeline_mode<synchronous>, transform_indices = @transform_0, window_bounds = array<i64: 2, 4, 4, 40>}, {transform_indices = @transform_1, window_bounds = array<i64: 9, 40, 32>}, {transform_indices = @transform_2, window_bounds = array<i64: 1, 32>}, {transform_indices = @transform_3, window_bounds = array<i64: 1, 32>}, {transform_indices = @transform_4, window_bounds = array<i64: 16, 32>}, {pipeline_mode = #tpu.pipeline_mode<synchronous>, transform_indices = @transform_5, window_bounds = array<i64: 1, 1>}, {pipeline_mode = #tpu.pipeline_mode<synchronous>, transform_indices = @transform_6, window_bounds = array<i64: 2, 1>}]} {
    %c0_i32 = arith.constant 0 : i32
    %0 = arith.cmpi eq, %arg0, %c0_i32 : i32
    %1 = arith.extui %0 : i1 to i32
    %c0_i32_0 = arith.constant 0 : i32
    %2 = arith.cmpi ne, %1, %c0_i32_0 : i32
    scf.if %2 {
      %cst_84 = arith.constant 0.000000e+00 : f32
      %104 = vector.broadcast %cst_84 : f32 to vector<2x6x6x40xf32>
      %c0_85 = arith.constant 0 : index
      %c0_86 = arith.constant 0 : index
      %c0_87 = arith.constant 0 : index
      %c0_88 = arith.constant 0 : index
      %105 = vector.load %arg8[%c0_85, %c0_86, %c0_87, %c0_88] : memref<2x6x6x40xf32, #tpu.memory_space<vmem>>, vector<2x6x6x40xf32>
      tpu.vector_store %arg8[%c0_85, %c0_86, %c0_87, %c0_88], %104 {strides = array<i32>} : memref<2x6x6x40xf32, #tpu.memory_space<vmem>>, vector<2x6x6x40xf32>,
      %c0_89 = arith.constant 0 : index
      %c0_90 = arith.constant 0 : index
      %c0_91 = arith.constant 0 : index
      %c0_92 = arith.constant 0 : index
      %106 = vector.load %arg1[%c0_89, %c0_90, %c0_91, %c0_92] : memref<2x4x4x40xf32, #tpu.memory_space<vmem>>, vector<2x4x4x40xf32>
      %c0_93 = arith.constant 0 : index
      %c1_94 = arith.constant 1 : index
      %c1_95 = arith.constant 1 : index
      %c0_96 = arith.constant 0 : index
      %107 = vector.load %arg8[%c0_93, %c1_94, %c1_95, %c0_96] : memref<2x6x6x40xf32, #tpu.memory_space<vmem>>, vector<2x4x4x40xf32>
      tpu.vector_store %arg8[%c0_93, %c1_94, %c1_95, %c0_96], %106 {strides = array<i32>} : memref<2x6x6x40xf32, #tpu.memory_space<vmem>>, vector<2x4x4x40xf32>,
      %cst_97 = arith.constant 0.000000e+00 : f32
      %108 = vector.broadcast %cst_97 : f32 to vector<2x1xf32>
      %c0_98 = arith.constant 0 : index
      %c0_99 = arith.constant 0 : index
      %109 = vector.load %arg9[%c0_98, %c0_99] : memref<2x1xf32, #tpu.memory_space<vmem>>, vector<2x1xf32>
      tpu.vector_store %arg9[%c0_98, %c0_99], %108 {strides = array<i32>} : memref<2x1xf32, #tpu.memory_space<vmem>>, vector<2x1xf32>,
    } else {
    }
    %c0 = arith.constant 0 : index
    %c0_1 = arith.constant 0 : index
    %c0_2 = arith.constant 0 : index
    %c0_3 = arith.constant 0 : index
    %3 = vector.load %arg8[%c0, %c0_1, %c0_2, %c0_3] : memref<2x6x6x40xf32, #tpu.memory_space<vmem>>, vector<2x4x4x40xf32>
    %4 = vector.shape_cast %3 : vector<2x4x4x40xf32> to vector<32x40xf32>
    %5 = arith.truncf %4 : vector<32x40xf32> to vector<32x40xbf16>
    %c0_4 = arith.constant 0 : index
    %c0_5 = arith.constant 0 : index
    %c0_6 = arith.constant 0 : index
    %6 = vector.load %arg2[%c0_4, %c0_5, %c0_6] : memref<9x40x32xbf16, #tpu.memory_space<vmem>>, vector<1x40x32xbf16>
    %7 = vector.shape_cast %6 : vector<1x40x32xbf16> to vector<40x32xbf16>
    %cst = arith.constant dense<0.000000e+00> : vector<32x32xf32>
    %8 = tpu.matmul %5, %7, %cst {dimension_numbers = #tpu.dot_dimension_numbers<[1], [0], [0], [1], [0, 0, 1, 1], [], []>} : vector<32x40xbf16>, vector<40x32xbf16>, vector<32x32xf32> -> vector<32x32xf32>
    %c0_7 = arith.constant 0 : index
    %c0_8 = arith.constant 0 : index
    %c1 = arith.constant 1 : index
    %c0_9 = arith.constant 0 : index
    %9 = vector.load %arg8[%c0_7, %c0_8, %c1, %c0_9] : memref<2x6x6x40xf32, #tpu.memory_space<vmem>>, vector<2x4x4x40xf32>
    %10 = vector.shape_cast %9 : vector<2x4x4x40xf32> to vector<32x40xf32>
    %11 = arith.truncf %10 : vector<32x40xf32> to vector<32x40xbf16>
    %c1_10 = arith.constant 1 : index
    %c0_11 = arith.constant 0 : index
    %c0_12 = arith.constant 0 : index
    %12 = vector.load %arg2[%c1_10, %c0_11, %c0_12] : memref<9x40x32xbf16, #tpu.memory_space<vmem>>, vector<1x40x32xbf16>
    %13 = vector.shape_cast %12 : vector<1x40x32xbf16> to vector<40x32xbf16>
    %cst_13 = arith.constant dense<0.000000e+00> : vector<32x32xf32>
    %14 = tpu.matmul %11, %13, %cst_13 {dimension_numbers = #tpu.dot_dimension_numbers<[1], [0], [0], [1], [0, 0, 1, 1], [], []>} : vector<32x40xbf16>, vector<40x32xbf16>, vector<32x32xf32> -> vector<32x32xf32>
    %15 = arith.addf %8, %14 : vector<32x32xf32>
    %c0_14 = arith.constant 0 : index
    %c0_15 = arith.constant 0 : index
    %c2 = arith.constant 2 : index
    %c0_16 = arith.constant 0 : index
    %16 = vector.load %arg8[%c0_14, %c0_15, %c2, %c0_16] : memref<2x6x6x40xf32, #tpu.memory_space<vmem>>, vector<2x4x4x40xf32>
    %17 = vector.shape_cast %16 : vector<2x4x4x40xf32> to vector<32x40xf32>
    %18 = arith.truncf %17 : vector<32x40xf32> to vector<32x40xbf16>
    %c2_17 = arith.constant 2 : index
    %c0_18 = arith.constant 0 : index
    %c0_19 = arith.constant 0 : index
    %19 = vector.load %arg2[%c2_17, %c0_18, %c0_19] : memref<9x40x32xbf16, #tpu.memory_space<vmem>>, vector<1x40x32xbf16>
    %20 = vector.shape_cast %19 : vector<1x40x32xbf16> to vector<40x32xbf16>
    %cst_20 = arith.constant dense<0.000000e+00> : vector<32x32xf32>
    %21 = tpu.matmul %18, %20, %cst_20 {dimension_numbers = #tpu.dot_dimension_numbers<[1], [0], [0], [1], [0, 0, 1, 1], [], []>} : vector<32x40xbf16>, vector<40x32xbf16>, vector<32x32xf32> -> vector<32x32xf32>
    %22 = arith.addf %15, %21 : vector<32x32xf32>
    %c0_21 = arith.constant 0 : index
    %c1_22 = arith.constant 1 : index
    %c0_23 = arith.constant 0 : index
    %c0_24 = arith.constant 0 : index
    %23 = vector.load %arg8[%c0_21, %c1_22, %c0_23, %c0_24] : memref<2x6x6x40xf32, #tpu.memory_space<vmem>>, vector<2x4x4x40xf32>
    %24 = vector.shape_cast %23 : vector<2x4x4x40xf32> to vector<32x40xf32>
    %25 = arith.truncf %24 : vector<32x40xf32> to vector<32x40xbf16>
    %c3 = arith.constant 3 : index
    %c0_25 = arith.constant 0 : index
    %c0_26 = arith.constant 0 : index
    %26 = vector.load %arg2[%c3, %c0_25, %c0_26] : memref<9x40x32xbf16, #tpu.memory_space<vmem>>, vector<1x40x32xbf16>
    %27 = vector.shape_cast %26 : vector<1x40x32xbf16> to vector<40x32xbf16>
    %cst_27 = arith.constant dense<0.000000e+00> : vector<32x32xf32>
    %28 = tpu.matmul %25, %27, %cst_27 {dimension_numbers = #tpu.dot_dimension_numbers<[1], [0], [0], [1], [0, 0, 1, 1], [], []>} : vector<32x40xbf16>, vector<40x32xbf16>, vector<32x32xf32> -> vector<32x32xf32>
    %29 = arith.addf %22, %28 : vector<32x32xf32>
    %c0_28 = arith.constant 0 : index
    %c1_29 = arith.constant 1 : index
    %c1_30 = arith.constant 1 : index
    %c0_31 = arith.constant 0 : index
    %30 = vector.load %arg8[%c0_28, %c1_29, %c1_30, %c0_31] : memref<2x6x6x40xf32, #tpu.memory_space<vmem>>, vector<2x4x4x40xf32>
    %31 = vector.shape_cast %30 : vector<2x4x4x40xf32> to vector<32x40xf32>
    %32 = arith.truncf %31 : vector<32x40xf32> to vector<32x40xbf16>
    %c4 = arith.constant 4 : index
    %c0_32 = arith.constant 0 : index
    %c0_33 = arith.constant 0 : index
    %33 = vector.load %arg2[%c4, %c0_32, %c0_33] : memref<9x40x32xbf16, #tpu.memory_space<vmem>>, vector<1x40x32xbf16>
    %34 = vector.shape_cast %33 : vector<1x40x32xbf16> to vector<40x32xbf16>
    %cst_34 = arith.constant dense<0.000000e+00> : vector<32x32xf32>
    %35 = tpu.matmul %32, %34, %cst_34 {dimension_numbers = #tpu.dot_dimension_numbers<[1], [0], [0], [1], [0, 0, 1, 1], [], []>} : vector<32x40xbf16>, vector<40x32xbf16>, vector<32x32xf32> -> vector<32x32xf32>
    %36 = arith.addf %29, %35 : vector<32x32xf32>
    %c0_35 = arith.constant 0 : index
    %c1_36 = arith.constant 1 : index
    %c2_37 = arith.constant 2 : index
    %c0_38 = arith.constant 0 : index
    %37 = vector.load %arg8[%c0_35, %c1_36, %c2_37, %c0_38] : memref<2x6x6x40xf32, #tpu.memory_space<vmem>>, vector<2x4x4x40xf32>
    %38 = vector.shape_cast %37 : vector<2x4x4x40xf32> to vector<32x40xf32>
    %39 = arith.truncf %38 : vector<32x40xf32> to vector<32x40xbf16>
    %c5 = arith.constant 5 : index
    %c0_39 = arith.constant 0 : index
    %c0_40 = arith.constant 0 : index
    %40 = vector.load %arg2[%c5, %c0_39, %c0_40] : memref<9x40x32xbf16, #tpu.memory_space<vmem>>, vector<1x40x32xbf16>
    %41 = vector.shape_cast %40 : vector<1x40x32xbf16> to vector<40x32xbf16>
    %cst_41 = arith.constant dense<0.000000e+00> : vector<32x32xf32>
    %42 = tpu.matmul %39, %41, %cst_41 {dimension_numbers = #tpu.dot_dimension_numbers<[1], [0], [0], [1], [0, 0, 1, 1], [], []>} : vector<32x40xbf16>, vector<40x32xbf16>, vector<32x32xf32> -> vector<32x32xf32>
    %43 = arith.addf %36, %42 : vector<32x32xf32>
    %c0_42 = arith.constant 0 : index
    %c2_43 = arith.constant 2 : index
    %c0_44 = arith.constant 0 : index
    %c0_45 = arith.constant 0 : index
    %44 = vector.load %arg8[%c0_42, %c2_43, %c0_44, %c0_45] : memref<2x6x6x40xf32, #tpu.memory_space<vmem>>, vector<2x4x4x40xf32>
    %45 = vector.shape_cast %44 : vector<2x4x4x40xf32> to vector<32x40xf32>
    %46 = arith.truncf %45 : vector<32x40xf32> to vector<32x40xbf16>
    %c6 = arith.constant 6 : index
    %c0_46 = arith.constant 0 : index
    %c0_47 = arith.constant 0 : index
    %47 = vector.load %arg2[%c6, %c0_46, %c0_47] : memref<9x40x32xbf16, #tpu.memory_space<vmem>>, vector<1x40x32xbf16>
    %48 = vector.shape_cast %47 : vector<1x40x32xbf16> to vector<40x32xbf16>
    %cst_48 = arith.constant dense<0.000000e+00> : vector<32x32xf32>
    %49 = tpu.matmul %46, %48, %cst_48 {dimension_numbers = #tpu.dot_dimension_numbers<[1], [0], [0], [1], [0, 0, 1, 1], [], []>} : vector<32x40xbf16>, vector<40x32xbf16>, vector<32x32xf32> -> vector<32x32xf32>
    %50 = arith.addf %43, %49 : vector<32x32xf32>
    %c0_49 = arith.constant 0 : index
    %c2_50 = arith.constant 2 : index
    %c1_51 = arith.constant 1 : index
    %c0_52 = arith.constant 0 : index
    %51 = vector.load %arg8[%c0_49, %c2_50, %c1_51, %c0_52] : memref<2x6x6x40xf32, #tpu.memory_space<vmem>>, vector<2x4x4x40xf32>
    %52 = vector.shape_cast %51 : vector<2x4x4x40xf32> to vector<32x40xf32>
    %53 = arith.truncf %52 : vector<32x40xf32> to vector<32x40xbf16>
    %c7 = arith.constant 7 : index
    %c0_53 = arith.constant 0 : index
    %c0_54 = arith.constant 0 : index
    %54 = vector.load %arg2[%c7, %c0_53, %c0_54] : memref<9x40x32xbf16, #tpu.memory_space<vmem>>, vector<1x40x32xbf16>
    %55 = vector.shape_cast %54 : vector<1x40x32xbf16> to vector<40x32xbf16>
    %cst_55 = arith.constant dense<0.000000e+00> : vector<32x32xf32>
    %56 = tpu.matmul %53, %55, %cst_55 {dimension_numbers = #tpu.dot_dimension_numbers<[1], [0], [0], [1], [0, 0, 1, 1], [], []>} : vector<32x40xbf16>, vector<40x32xbf16>, vector<32x32xf32> -> vector<32x32xf32>
    %57 = arith.addf %50, %56 : vector<32x32xf32>
    %c0_56 = arith.constant 0 : index
    %c2_57 = arith.constant 2 : index
    %c2_58 = arith.constant 2 : index
    %c0_59 = arith.constant 0 : index
    %58 = vector.load %arg8[%c0_56, %c2_57, %c2_58, %c0_59] : memref<2x6x6x40xf32, #tpu.memory_space<vmem>>, vector<2x4x4x40xf32>
    %59 = vector.shape_cast %58 : vector<2x4x4x40xf32> to vector<32x40xf32>
    %60 = arith.truncf %59 : vector<32x40xf32> to vector<32x40xbf16>
    %c8 = arith.constant 8 : index
    %c0_60 = arith.constant 0 : index
    %c0_61 = arith.constant 0 : index
    %61 = vector.load %arg2[%c8, %c0_60, %c0_61] : memref<9x40x32xbf16, #tpu.memory_space<vmem>>, vector<1x40x32xbf16>
    %62 = vector.shape_cast %61 : vector<1x40x32xbf16> to vector<40x32xbf16>
    %cst_62 = arith.constant dense<0.000000e+00> : vector<32x32xf32>
    %63 = tpu.matmul %60, %62, %cst_62 {dimension_numbers = #tpu.dot_dimension_numbers<[1], [0], [0], [1], [0, 0, 1, 1], [], []>} : vector<32x40xbf16>, vector<40x32xbf16>, vector<32x32xf32> -> vector<32x32xf32>
    %64 = arith.addf %57, %63 : vector<32x32xf32>
    %cst_63 = arith.constant dense<0.000000e+00> : vector<32xf32>
    %65 = vector.multi_reduction <add>, %64, %cst_63 [0] : vector<32x32xf32> to vector<32xf32>
    %66 = vector.shape_cast %65 : vector<32xf32> to vector<1x32xf32>
    %cst_64 = arith.constant 3.200000e+01 : f32
    %67 = vector.broadcast %cst_64 : f32 to vector<1x32xf32>
    %68 = arith.divf %66, %67 : vector<1x32xf32>
    %69 = vector.broadcast %68 : vector<1x32xf32> to vector<32x32xf32>
    %70 = arith.subf %64, %69 : vector<32x32xf32>
    %71 = arith.mulf %70, %70 : vector<32x32xf32>
    %cst_65 = arith.constant dense<0.000000e+00> : vector<32xf32>
    %72 = vector.multi_reduction <add>, %71, %cst_65 [0] : vector<32x32xf32> to vector<32xf32>
    %73 = vector.shape_cast %72 : vector<32xf32> to vector<1x32xf32>
    %cst_66 = arith.constant 3.200000e+01 : f32
    %74 = vector.broadcast %cst_66 : f32 to vector<1x32xf32>
    %75 = arith.divf %73, %74 : vector<1x32xf32>
    %cst_67 = arith.constant 9.99999974E-6 : f32
    %76 = vector.broadcast %cst_67 : f32 to vector<1x32xf32>
    %77 = arith.addf %75, %76 : vector<1x32xf32>
    %78 = math.rsqrt %77 : vector<1x32xf32>
    %79 = vector.broadcast %78 : vector<1x32xf32> to vector<32x32xf32>
    %80 = arith.mulf %70, %79 : vector<32x32xf32>
    %c0_68 = arith.constant 0 : index
    %c0_69 = arith.constant 0 : index
    %81 = vector.load %arg3[%c0_68, %c0_69] : memref<1x32xf32, #tpu.memory_space<vmem>>, vector<1x32xf32>
    %82 = vector.broadcast %81 : vector<1x32xf32> to vector<32x32xf32>
    %83 = arith.mulf %80, %82 : vector<32x32xf32>
    %c0_70 = arith.constant 0 : index
    %c0_71 = arith.constant 0 : index
    %84 = vector.load %arg4[%c0_70, %c0_71] : memref<1x32xf32, #tpu.memory_space<vmem>>, vector<1x32xf32>
    %85 = vector.broadcast %84 : vector<1x32xf32> to vector<32x32xf32>
    %86 = arith.addf %83, %85 : vector<32x32xf32>
    %cst_72 = arith.constant 2.000000e-01 : f32
    %87 = vector.broadcast %cst_72 : f32 to vector<32x32xf32>
    %88 = arith.mulf %87, %86 : vector<32x32xf32>
    %89 = arith.maximumf %86, %88 : vector<32x32xf32>
    %90 = vector.shape_cast %89 : vector<32x32xf32> to vector<2x16x32xf32>
    %c0_73 = arith.constant 0 : index
    %c0_74 = arith.constant 0 : index
    %91 = vector.load %arg5[%c0_73, %c0_74] : memref<16x32xf32, #tpu.memory_space<vmem>>, vector<16x32xf32>
    %92 = vector.shape_cast %91 : vector<16x32xf32> to vector<1x16x32xf32>
    %93 = vector.broadcast %92 : vector<1x16x32xf32> to vector<2x16x32xf32>
    %94 = arith.mulf %90, %93 : vector<2x16x32xf32>
    %cst_75 = arith.constant dense<0.000000e+00> : vector<2x32xf32>
    %95 = vector.multi_reduction <add>, %94, %cst_75 [1] : vector<2x16x32xf32> to vector<2x32xf32>
    %cst_76 = arith.constant 1.000000e+00 : f32
    %96 = vector.broadcast %cst_76 : f32 to vector<32x1xf32>
    %cst_77 = arith.constant dense<0.000000e+00> : vector<2x1xf32>
    %97 = tpu.matmul %95, %96, %cst_77 {dimension_numbers = #tpu.dot_dimension_numbers<[1], [0], [0], [1], [0, 0, 1, 1], [], []>} : vector<2x32xf32>, vector<32x1xf32>, vector<2x1xf32> -> vector<2x1xf32>
    %c0_78 = arith.constant 0 : index
    %c0_79 = arith.constant 0 : index
    %98 = vector.load %arg9[%c0_78, %c0_79] : memref<2x1xf32, #tpu.memory_space<vmem>>, vector<2x1xf32>
    %99 = arith.addf %98, %97 : vector<2x1xf32>
    %c0_80 = arith.constant 0 : index
    %c0_81 = arith.constant 0 : index
    %100 = vector.load %arg9[%c0_80, %c0_81] : memref<2x1xf32, #tpu.memory_space<vmem>>, vector<2x1xf32>
    tpu.vector_store %arg9[%c0_80, %c0_81], %99 {strides = array<i32>} : memref<2x1xf32, #tpu.memory_space<vmem>>, vector<2x1xf32>,
    %c0_i32_82 = arith.constant 0 : i32
    %101 = arith.cmpi eq, %arg0, %c0_i32_82 : i32
    %102 = arith.extui %101 : i1 to i32
    %c0_i32_83 = arith.constant 0 : i32
    %103 = arith.cmpi ne, %102, %c0_i32_83 : i32
    scf.if %103 {
      %c0_84 = arith.constant 0 : index
      %c0_85 = arith.constant 0 : index
      %104 = vector.load %arg9[%c0_84, %c0_85] : memref<2x1xf32, #tpu.memory_space<vmem>>, vector<2x1xf32>
      %c0_86 = arith.constant 0 : index
      %c0_87 = arith.constant 0 : index
      %105 = vector.load %arg6[%c0_86, %c0_87] : memref<1x1xf32, #tpu.memory_space<vmem>>, vector<1x1xf32>
      %106 = vector.broadcast %105 : vector<1x1xf32> to vector<2x1xf32>
      %107 = arith.addf %104, %106 : vector<2x1xf32>
      %cst_88 = arith.constant 0.000000e+00 : f32
      %108 = vector.broadcast %cst_88 : f32 to vector<2x1xf32>
      %109 = arith.subf %108, %107 : vector<2x1xf32>
      %110 = math.exp %109 : vector<2x1xf32>
      %cst_89 = arith.constant 1.000000e+00 : f32
      %111 = vector.broadcast %cst_89 : f32 to vector<2x1xf32>
      %112 = arith.addf %111, %110 : vector<2x1xf32>
      %cst_90 = arith.constant 1.000000e+00 : f32
      %113 = vector.broadcast %cst_90 : f32 to vector<2x1xf32>
      %114 = arith.divf %113, %112 : vector<2x1xf32>
      %c0_91 = arith.constant 0 : index
      %c0_92 = arith.constant 0 : index
      %115 = vector.load %arg7[%c0_91, %c0_92] : memref<2x1xf32, #tpu.memory_space<vmem>>, vector<2x1xf32>
      tpu.vector_store %arg7[%c0_91, %c0_92], %114 {strides = array<i32>} : memref<2x1xf32, #tpu.memory_space<vmem>>, vector<2x1xf32>,
    } else {
    }
    return
  }
  func.func @transform_0(%arg0: i32) -> (i32, i32, i32, i32) {
    %c0_i32 = arith.constant 0 : i32
    %c0_i32_0 = arith.constant 0 : i32
    %c0_i32_1 = arith.constant 0 : i32
    %c0_i32_2 = arith.constant 0 : i32
    %c0_i32_3 = arith.constant 0 : i32
    return %c0_i32, %c0_i32_0, %c0_i32_1, %c0_i32_2 : i32, i32, i32, i32
  }
  func.func @transform_1(%arg0: i32) -> (i32, i32, i32) {
    %c0_i32 = arith.constant 0 : i32
    %c0_i32_0 = arith.constant 0 : i32
    %c0_i32_1 = arith.constant 0 : i32
    return %c0_i32, %c0_i32_0, %arg0 : i32, i32, i32
  }
  func.func @transform_2(%arg0: i32) -> (i32, i32) {
    %c0_i32 = arith.constant 0 : i32
    %c0_i32_0 = arith.constant 0 : i32
    return %c0_i32, %arg0 : i32, i32
  }
  func.func @transform_3(%arg0: i32) -> (i32, i32) {
    %c0_i32 = arith.constant 0 : i32
    %c0_i32_0 = arith.constant 0 : i32
    return %c0_i32, %arg0 : i32, i32
  }
  func.func @transform_4(%arg0: i32) -> (i32, i32) {
    %c0_i32 = arith.constant 0 : i32
    %c0_i32_0 = arith.constant 0 : i32
    return %c0_i32, %arg0 : i32, i32
  }
  func.func @transform_5(%arg0: i32) -> (i32, i32) {
    %c0_i32 = arith.constant 0 : i32
    %c0_i32_0 = arith.constant 0 : i32
    %c0_i32_1 = arith.constant 0 : i32
    return %c0_i32, %c0_i32_0 : i32, i32
  }
  func.func @transform_6(%arg0: i32) -> (i32, i32) {
    %c0_i32 = arith.constant 0 : i32
    %c0_i32_0 = arith.constant 0 : i32
    %c0_i32_1 = arith.constant 0 : i32
    return %c0_i32, %c0_i32_0 : i32, i32
  }
}

</mosaic_0001>

<bundles_post_ra>
// kernel: _cond_forward.1
= control target key start
LH: loop header
LB: loop body
LE: loop exit
PB: predicated region body
PF: predicated region fallthrough
CT: control target
= control target key end

     0   :  { %vm148_vm0 = vcmask 1043456   ;;  %vm30_vm1 = vcmask 324608   ;;  %vm52_vm2 = vcmask 322560   ;;  %v1561_v1 = vmov 0.0   ;;  %s1800_s1 = inlined_call_operand.vmem [shape: bf16[9,40,32], index: 1, kind: input, shape index: {}]   ;;  %s1801_s0 = inlined_call_operand.vmem [shape: f32[2,4,4,40], index: 0, kind: input, shape index: {}]   ;;  %s1802_s5 = inlined_call_operand.<no memory space> [shape: f32[1,1], index: 5, kind: input, shape index: {}]   ;;  %s1803_s2 = inlined_call_operand.vmem [shape: f32[1,32], index: 2, kind: input, shape index: {}]   ;;  %s1804_s3 = inlined_call_operand.vmem [shape: f32[1,32], index: 3, kind: input, shape index: {}]   ;;  %s1805_s4 = inlined_call_operand.vmem [shape: f32[16,32], index: 4, kind: input, shape index: {}]   ;;  %s1806_s6 = inlined_call_operand.vmem [shape: f32[2,1], index: 6, kind: output, shape index: {}]  }
   0x1   :  { %v1492_v0 = vld [vmem:[%s1800_s1 + $0x24] ss:$0 sps:$4 sm:$0xff]   ;;  %31 = vst.msk [vmem:[#allocation2] sm:$0x3f] %vm30_vm1, %v1561_v1  ;;  %32 = vst.msk [vmem:[#allocation2 + $0x8] sm:$0x3f] %vm30_vm1, %v1561_v1 }
   0x2   :  { %33 = vst.msk [vmem:[#allocation2 + $0x10] sm:$0x3f] %vm30_vm1, %v1561_v1  ;;  %34 = vst.msk [vmem:[#allocation2 + $0x18] sm:$0x3f] %vm30_vm1, %v1561_v1  ;;  %v1493_v2 = vld [vmem:[%s1800_s1 + $0x10] ss:$0 sps:$4 sm:$0xff]   ;;  %1480 = vmatprep.subr.msk.bf16.mxu0 %vm148_vm0, %v1492_v0 }
   0x3   :  { %35 = vst.msk [vmem:[#allocation2 + $0x20] sm:$0x3f] %vm30_vm1, %v1561_v1  ;;  %36 = vst.msk [vmem:[#allocation2 + $0x28] sm:$0x3f] %vm30_vm1, %v1561_v1  ;;  %v150_v3 = vsel %vm148_vm0, %v1492_v0, 0  ;;  %v1494_v4 = vld [vmem:[%s1800_s1 + $0x1c] sm:$0xff]   ;;  %1481 = vmatprep.subr.msk.bf16.mxu1 %vm148_vm0, %v1493_v2 }
   0x4   :  { %37 = vst.msk [vmem:[#allocation2 + $0x30] sm:$0x3f] %vm30_vm1, %v1561_v1  ;;  %38 = vst.msk [vmem:[#allocation2 + $0x38] sm:$0x3f] %vm30_vm1, %v1561_v1  ;;  %1380 = vmatpush3.bf16.msra.mxu0 %v150_v3  ;;  %v223_v5 = vsel %vm148_vm0, %v1493_v2, 0  ;;  %v1495_v6 = vld [vmem:[%s1800_s1 + $0x8] sm:$0xff]  }
   0x5   :  { %39 = vst.msk [vmem:[#allocation2 + $0x40] sm:$0x3f] %vm30_vm1, %v1561_v1  ;;  %40 = vst.msk [vmem:[#allocation2 + $0x48] sm:$0x3f] %vm30_vm1, %v1561_v1  ;;  %1390 = vmatpush3.bf16.msra.mxu1 %v223_v5  ;;  %1381 = vmatprep.subr.bf16.mxu0 %v1494_v4  ;;  %v1496_v7 = vld [vmem:[%s1800_s1 + $0x14] sm:$0xff]   ;;  %v1497_v8 = vld [vmem:[%s1800_s1] sm:$0xff]  }
   0x6   :  { %41 = vst.msk [vmem:[#allocation2 + $0x50] sm:$0x3f] %vm30_vm1, %v1561_v1  ;;  %42 = vst.msk [vmem:[#allocation2 + $0x58] sm:$0x3f] %vm30_vm1, %v1561_v1  ;;  %1391 = vmatprep.subr.bf16.mxu1 %v1495_v6  ;;  %v43_v9 = vld [vmem:[%s1801_s0] sm:$0xf] }
   0x7   :  { %v44_v10 = vld [vmem:[%s1801_s0 + $0x4] sm:$0xf]  ;;  %v45_v11 = vld [vmem:[%s1801_s0 + $0x8] sm:$0xf]  ;;  %53 = vst.msk [vmem:[#allocation2 + $0x9] sm:$0xf] %vm52_vm2, %v43_v9 }
   0x8   :  { %54 = vst.msk [vmem:[#allocation2 + $0x11] sm:$0xf] %vm52_vm2, %v44_v10  ;;  %v47_v12 = vld [vmem:[%s1801_s0 + $0x10] sm:$0xf]  ;;  %v48_v13 = vld [vmem:[%s1801_s0 + $0x14] sm:$0xf]  ;;  %1382 = vmatpush3.bf16.msra.mxu0 %v1494_v4 }
   0x9   :  { %55 = vst.msk [vmem:[#allocation2 + $0x19] sm:$0xf] %vm52_vm2, %v45_v11  ;;  %v49_v14 = vld [vmem:[%s1801_s0 + $0x18] sm:$0xf]  ;;  %57 = vst.msk [vmem:[#allocation2 + $0x39] sm:$0xf] %vm52_vm2, %v47_v12  ;;  %1392 = vmatpush3.bf16.msra.mxu1 %v1495_v6  ;;  %1383 = vmatprep.subr.bf16.mxu0 %v1496_v7 }
   0xa   :  { %58 = vst.msk [vmem:[#allocation2 + $0x41] sm:$0xf] %vm52_vm2, %v48_v13  ;;  %59 = vst.msk [vmem:[#allocation2 + $0x49] sm:$0xf] %vm52_vm2, %v49_v14  ;;  %1393 = vmatprep.subr.bf16.mxu1 %v1497_v8  ;;  %v1506_v15 = vld [vmem:[%s1800_s1 + $0x38] ss:$0 sps:$4 sm:$0xff]  }
   0xb   :  { %v1507_v16 = vld [vmem:[%s1800_s1 + $0x4c] ss:$0 sps:$4 sm:$0xff]   ;;  %vm141_vm3 = vcmask 326656   ;;  %v328_v28 = vsel %vm148_vm0, %v1506_v15, 0  ;;  %v1508_v29 = vld [vmem:[%s1800_s1 + $0x30] sm:$0xff]   ;;  %v1509_v31 = vld [vmem:[%s1800_s1 + $0x44] sm:$0xff]  }
   0xc   :  { %1384 = vmatpush3.bf16.msra.mxu0 %v1496_v7  ;;  %v438_v30 = vsel %vm148_vm0, %v1507_v16, 0  ;;  %v1510_v33 = vld [vmem:[%s1800_s1 + $0x28] sm:$0xff]   ;;  %v1511_v36 = vld [vmem:[%s1800_s1 + $0x3c] sm:$0xff]   ;;  %v1521_v45 = vld [vmem:[%s1800_s1 + $0x74] ss:$0 sps:$4 sm:$0xff]   ;;  %vm1563_vm4 = vmmov 0  }
   0xd   :  { %1394 = vmatpush3.bf16.msra.mxu1 %v1497_v8  ;;  %1482 = vmatprep.subr.msk.bf16.mxu0 %vm148_vm0, %v1506_v15  ;;  %v46_v40 = vld [vmem:[%s1801_s0 + $0xc] sm:$0xf]  ;;  %v1516_v41 = vld [vmem:[%s1800_s1 + $0x60] ss:$0 sps:$4 sm:$0xff]   ;;  %v50_v42 = vld [vmem:[%s1801_s0 + $0x1c] sm:$0xf] }
   0xe   :  { %v1498_v17 = vld [vmem:[#allocation2 + $0x1] ss:$8 sps:$4 sm:$0xff]   ;;  %1483 = vmatprep.subr.msk.bf16.mxu1 %vm148_vm0, %v1507_v16  ;;  %56 = vst.msk [vmem:[#allocation2 + $0x21] sm:$0xf] %vm52_vm2, %v46_v40  ;;  %60 = vst.msk [vmem:[#allocation2 + $0x51] sm:$0xf] %vm52_vm2, %v50_v42 }
   0xf   :  { %v1500_v19 = vld [vmem:[#allocation2] ss:$8 sps:$4 sm:$0xff]   ;;  %v547_v46 = vsel %vm148_vm0, %v1516_v41, 0  ;;  %v1522_v47 = vld [vmem:[%s1800_s1 + $0x58] sm:$0xff]   ;;  %v656_v50 = vsel %vm148_vm0, %v1521_v45, 0  ;;  %v1524_v51 = vld [vmem:[%s1800_s1 + $0x50] sm:$0xff]  }
  0x10   :  { %v1499_v18 = vld [vmem:[#allocation2 + $0x11] ss:$8 sps:$4 sm:$0xff]   ;;  %v1512_v34 = vld [vmem:[#allocation2 + $0x2] ss:$8 sps:$4 sm:$0xff]   ;;  %v1530_v62 = vld [vmem:[%s1800_s1 + $0x88] ss:$0 sps:$4 sm:$0xff]  }
  0x11   :  { %v118_v20 = vpack.c.bf16 %v1499_v18, %v1498_v17  ;;  %v1501_v21 = vld [vmem:[#allocation2 + $0x10] ss:$8 sps:$4 sm:$0xff]   ;;  %v1503_v23 = vld [vmem:[#allocation2 + $0x41] ss:$8 sps:$4 sm:$0xff]   ;;  %v766_v3 = vsel %vm148_vm0, %v1530_v62, 0  ;;  %vm61_vm5 = vcmask 1024  }
  0x12   :  { %v1502_v22 = vld [vmem:[#allocation2 + $0x31] ss:$8 sps:$4 sm:$0xff]   ;;  %v87_v24 = vpack.c.bf16 %v1501_v21, %v1500_v19  ;;  %v1505_v27 = vld [vmem:[#allocation2 + $0x40] ss:$8 sps:$4 sm:$0xff]   ;;  %v1544_v19 = vld [vmem:[%s1800_s1 + $0xb0] ss:$0 sps:$4 sm:$0xff]  }
  0x13   :  { %1385 = vmatprep.mubr.msk.bf16.mxu0 %vm141_vm3, %v118_v20  ;;  %v119_v25 = vpack.c.bf16 %v1503_v23, %v1502_v22  ;;  %v1504_v26 = vld [vmem:[#allocation2 + $0x30] ss:$8 sps:$4 sm:$0xff]   ;;  %v1515_v39 = vld [vmem:[#allocation2 + $0x42] ss:$8 sps:$4 sm:$0xff]   ;;  %v1535_v8 = vld [vmem:[%s1800_s1 + $0x9c] ss:$0 sps:$4 sm:$0xff]  }
  0x14   :  { %1395 = vmatprep.mubr.msk.bf16.mxu1 %vm141_vm3, %v87_v24  ;;  %v88_v32 = vpack.c.bf16 %v1505_v27, %v1504_v26  ;;  %v1513_v35 = vld [vmem:[#allocation2 + $0x12] ss:$8 sps:$4 sm:$0xff]   ;;  %v1525_v61 = vld [vmem:[%s1800_s1 + $0x64] sm:$0xff]   ;;  %v875_v11 = vsel %vm148_vm0, %v1535_v8, 0  ;;  %v984_v23 = vsel %vm148_vm0, %v1544_v19, 0  ;;  %vm1039_vm6 = vcmask 261120  }
  0x15   :  { %1386 = vmatmul.mubr.msk.bf16.vlgmr.msra.gmra.mxu0 %vm141_vm3, %v119_v25  ;;  %v298_v37 = vpack.c.bf16 %v1513_v35, %v1512_v34  ;;  %v1514_v38 = vld [vmem:[#allocation2 + $0x32] ss:$8 sps:$4 sm:$0xff]   ;;  %v1536_v4 = vld [vmem:[%s1800_s1 + $0x80] sm:$0xff]   ;;  %v1549_v24 = vld [vmem:[%s1800_s1 + $0xa8] sm:$0xff]   ;;  %62 = vst.msk [vmem:[#allocation3] sm:$0x3] %vm61_vm5, %v1561_v1 }
  0x16   :  { %1400 = vmatpush3.bf16.msra.mxu0 %v328_v28  ;;  %1396 = vmatmul.mubr.msk.bf16.vlgmr.msra.gmra.mxu1 %vm141_vm3, %v88_v32  ;;  %v299_v43 = vpack.c.bf16 %v1515_v39, %v1514_v38  ;;  %v1517_v44 = vld [vmem:[#allocation2 + $0x8] ss:$8 sps:$4 sm:$0xff]   ;;  %v1519_v48 = vld [vmem:[#allocation2 + $0x38] ss:$8 sps:$4 sm:$0xff]   ;;  %v1562_v39 = vmov 1.0   ;;  %vm1139_vm7 = vcmask 1041409  }
  0x17   :  { %1401 = vmatprep.subr.bf16.mxu0 %v1508_v29  ;;  %1410 = vmatpush3.bf16.msra.mxu1 %v438_v30  ;;  %v1518_v49 = vld [vmem:[#allocation2 + $0x18] ss:$8 sps:$4 sm:$0xff]   ;;  %v1520_v53 = vld [vmem:[#allocation2 + $0x48] ss:$8 sps:$4 sm:$0xff]  }
  0x18   :  { %1411 = vmatprep.subr.bf16.mxu1 %v1509_v31  ;;  %1405 = vmatprep.mubr.msk.bf16.mxu0 %vm141_vm3, %v298_v37  ;;  %v408_v52 = vpack.c.bf16 %v1518_v49, %v1517_v44  ;;  %v1523_v54 = vld [vmem:[%s1800_s1 + $0x6c] sm:$0xff]   ;;  %v1527_v56 = vld [vmem:[#allocation2 + $0x19] ss:$8 sps:$4 sm:$0xff]   ;;  %v409_v57 = vpack.c.bf16 %v1520_v53, %v1519_v48 }
  0x19   :  { %v1526_v55 = vld [vmem:[#allocation2 + $0x9] ss:$8 sps:$4 sm:$0xff]   ;;  %v1528_v59 = vld [vmem:[#allocation2 + $0x39] ss:$8 sps:$4 sm:$0xff]  }
  0x1a   :  { %1402 = vmatpush3.bf16.msra.mxu0 %v1508_v29  ;;  %1415 = vmatprep.mubr.msk.bf16.mxu1 %vm141_vm3, %v408_v52  ;;  %v517_v58 = vpack.c.bf16 %v1527_v56, %v1526_v55  ;;  %v1529_v60 = vld [vmem:[#allocation2 + $0x49] ss:$8 sps:$4 sm:$0xff]   ;;  %v1532_v2 = vld [vmem:[#allocation2 + $0x1a] ss:$8 sps:$4 sm:$0xff]  }
  0x1b   :  { %1403 = vmatprep.subr.bf16.mxu0 %v1510_v33  ;;  %1412 = vmatpush3.bf16.msra.mxu1 %v1509_v31  ;;  %v518_v63 = vpack.c.bf16 %v1529_v60, %v1528_v59  ;;  %v1531_v0 = vld [vmem:[#allocation2 + $0xa] ss:$8 sps:$4 sm:$0xff]   ;;  %v1533_v6 = vld [vmem:[#allocation2 + $0x3a] ss:$8 sps:$4 sm:$0xff]  }
  0x1c   :  { %1413 = vmatprep.subr.bf16.mxu1 %v1511_v36  ;;  %v626_v5 = vpack.c.bf16 %v1532_v2, %v1531_v0  ;;  %v1534_v7 = vld [vmem:[#allocation2 + $0x4a] ss:$8 sps:$4 sm:$0xff]   ;;  %v1538_v10 = vld [vmem:[%s1800_s1 + $0x78] sm:$0xff]   ;;  %v1550_v28 = vld [vmem:[%s1800_s1 + $0xa0] sm:$0xff]  }
  0x1d   :  { %v627_v9 = vpack.c.bf16 %v1534_v7, %v1533_v6  ;;  %v1537_v12 = vld [vmem:[%s1800_s1 + $0x94] sm:$0xff]   ;;  %v1541_v14 = vld [vmem:[#allocation2 + $0x20] ss:$8 sps:$4 sm:$0xff]   ;;  %v1539_v15 = vld [vmem:[%s1800_s1 + $0x8c] sm:$0xff]  }
  0x1e   :  { %1404 = vmatpush3.bf16.msra.mxu0 %v1510_v33  ;;  %v1540_v13 = vld [vmem:[#allocation2 + $0x10] ss:$8 sps:$4 sm:$0xff]   ;;  %v1542_v16 = vld [vmem:[#allocation2 + $0x40] ss:$8 sps:$4 sm:$0xff]  }
  0x1f   :  { %1484 = vmatprep.subr.msk.bf16.mxu0 %vm148_vm0, %v1516_v41  ;;  %1414 = vmatpush3.bf16.msra.mxu1 %v1511_v36  ;;  %v736_v17 = vpack.c.bf16 %v1541_v14, %v1540_v13  ;;  %v1543_v18 = vld [vmem:[#allocation2 + $0x50] ss:$8 sps:$4 sm:$0xff]   ;;  %v1546_v22 = vld [vmem:[#allocation2 + $0x21] ss:$8 sps:$4 sm:$0xff]  }
  0x20   :  { %1485 = vmatprep.subr.msk.bf16.mxu1 %vm148_vm0, %v1521_v45  ;;  %v737_v20 = vpack.c.bf16 %v1543_v18, %v1542_v16  ;;  %v1545_v21 = vld [vmem:[#allocation2 + $0x11] ss:$8 sps:$4 sm:$0xff]   ;;  %v1547_v26 = vld [vmem:[#allocation2 + $0x41] ss:$8 sps:$4 sm:$0xff]  }
  0x21   :  { %1406 = vmatmul.mubr.msk.bf16.vlgmr.msra.gmra.mxu0 %vm141_vm3, %v299_v43  ;;  %v845_v25 = vpack.c.bf16 %v1546_v22, %v1545_v21  ;;  %v1548_v27 = vld [vmem:[#allocation2 + $0x51] ss:$8 sps:$4 sm:$0xff]   ;;  %v1552_v31 = vld [vmem:[#allocation2 + $0x22] ss:$8 sps:$4 sm:$0xff]  }
  0x22   :  { %1420 = vmatpush3.bf16.msra.mxu0 %v547_v46  ;;  %1416 = vmatmul.mubr.msk.bf16.vlgmr.msra.gmra.mxu1 %vm141_vm3, %v409_v57  ;;  %v846_v29 = vpack.c.bf16 %v1548_v27, %v1547_v26  ;;  %v1551_v30 = vld [vmem:[#allocation2 + $0x12] ss:$8 sps:$4 sm:$0xff]   ;;  %v1553_v33 = vld [vmem:[#allocation2 + $0x42] ss:$8 sps:$4 sm:$0xff]  }
  0x23   :  { %1421 = vmatprep.subr.bf16.mxu0 %v1522_v47  ;;  %1430 = vmatpush3.bf16.msra.mxu1 %v656_v50  ;;  %v954_v32 = vpack.c.bf16 %v1552_v31, %v1551_v30  ;;  %v1554_v34 = vld [vmem:[#allocation2 + $0x52] ss:$8 sps:$4 sm:$0xff]   ;;  %v11_v50 = vstv %s1802_s5 }
  0x24   :  { %1425 = vmatprep.mubr.msk.bf16.mxu0 %vm141_vm3, %v517_v58  ;;  %1431 = vmatprep.subr.bf16.mxu1 %v1523_v54  ;;  %v955_v35 = vpack.c.bf16 %v1554_v34, %v1553_v33  ;;  %12 = vst [vmem:[#allocation4] sm:$0x1] %v11_v50 }
  0x25   :  { %1435 = vmatprep.mubr.msk.bf16.mxu1 %vm141_vm3, %v626_v5 }
  0x26   :  { %1422 = vmatpush3.bf16.msra.mxu0 %v1522_v47 }
  0x27   :  { %1423 = vmatprep.subr.bf16.mxu0 %v1524_v51  ;;  %1432 = vmatpush3.bf16.msra.mxu1 %v1523_v54 }
  0x28   :  { %1433 = vmatprep.subr.bf16.mxu1 %v1525_v61 }
  0x2a   :  { %1424 = vmatpush3.bf16.msra.mxu0 %v1524_v51 }
  0x2b   :  { %1486 = vmatprep.subr.msk.bf16.mxu0 %vm148_vm0, %v1530_v62  ;;  %1434 = vmatpush3.bf16.msra.mxu1 %v1525_v61 }
  0x2c   :  { %1487 = vmatprep.subr.msk.bf16.mxu1 %vm148_vm0, %v1535_v8 }
  0x2d   :  { %1426 = vmatmul.mubr.msk.bf16.vlgmr.msra.gmra.mxu0 %vm141_vm3, %v518_v63 }
  0x2e   :  { %1440 = vmatpush3.bf16.msra.mxu0 %v766_v3  ;;  %1436 = vmatmul.mubr.msk.bf16.vlgmr.msra.gmra.mxu1 %vm141_vm3, %v627_v9 }
  0x2f   :  { %1441 = vmatprep.subr.bf16.mxu0 %v1536_v4  ;;  %1450 = vmatpush3.bf16.msra.mxu1 %v875_v11 }
  0x30   :  { %1451 = vmatprep.subr.bf16.mxu1 %v1537_v12  ;;  %1445 = vmatprep.mubr.msk.bf16.mxu0 %vm141_vm3, %v736_v17 }
  0x31   :  { %1455 = vmatprep.mubr.msk.bf16.mxu1 %vm141_vm3, %v845_v25 }
  0x32   :  { %1442 = vmatpush3.bf16.msra.mxu0 %v1536_v4 }
  0x33   :  { %1443 = vmatprep.subr.bf16.mxu0 %v1538_v10  ;;  %1452 = vmatpush3.bf16.msra.mxu1 %v1537_v12 }
  0x34   :  { %1453 = vmatprep.subr.bf16.mxu1 %v1539_v15 }
  0x36   :  { %1444 = vmatpush3.bf16.msra.mxu0 %v1538_v10 }
  0x37   :  { %1488 = vmatprep.subr.msk.bf16.mxu0 %vm148_vm0, %v1544_v19  ;;  %1454 = vmatpush3.bf16.msra.mxu1 %v1539_v15 }
  0x38   :  { %1469 = vmatprep.subr.mxu1 %v1561_v1 }
  0x39   :  { %1446 = vmatmul.mubr.msk.bf16.vlgmr.msra.gmra.mxu0 %vm141_vm3, %v737_v20 }
  0x3a   :  { %1460 = vmatpush3.bf16.msra.mxu0 %v984_v23  ;;  %1456 = vmatmul.mubr.msk.bf16.vlgmr.msra.gmra.mxu1 %vm141_vm3, %v846_v29 }
  0x3b   :  { %1461 = vmatprep.subr.bf16.mxu0 %v1549_v24  ;;  %1465 = vmatprep.mubr.msk.bf16.mxu0 %vm141_vm3, %v954_v32 }
  0x3c   :  { %1470 = vmatpush3.msra.mxu1 %v1562_v39  ;;  %1477 = vmatprep.mubr.msk.f32.mxu1 %vm1563_vm4, %v1561_v1 }
  0x3d   :  { %1471 = vmatprep.subr.mxu1 %v1561_v1 }
  0x3e   :  { %1462 = vmatpush3.bf16.msra.mxu0 %v1549_v24  ;;  %1472 = vmatpush3.msra.mxu1 %v1562_v39 }
  0x3f   :  { %1463 = vmatprep.subr.bf16.mxu0 %v1550_v28  ;;  %1473 = vmatprep.subr.mxu1 %v1561_v1 }
  0x40   :  { %1474 = vmatpush3.msra.mxu1 %v1562_v39 }
  0x41   :  { %1475 = vmatprep.subr.mxu1 %v1561_v1 }
  0x42   :  { %1464 = vmatpush3.bf16.msra.mxu0 %v1550_v28  ;;  %1476 = vmatpush3.msra.mxu1 %v1562_v39 }
  0x45   :  { %1466 = vmatmul.mubr.msk.bf16.vlgmr.msra.gmra.mxu0 %vm141_vm3, %v955_v35 }
  0xd5   :  { %v1387_v36 = vpop.f32.mrf.mxu0 }
  0xd6   :  { %v1397_v38 = vpop.f32.mrf.mxu1 }
  0xd7   :  { %v186_v37 = vpop.f32.mrf.mxu0  ;;  %v268_v61 = vadd.f32 %v1397_v38, %v1387_v36 }
  0xd8   :  { %v259_v41 = vpop.f32.mrf.mxu1 }
  0xd9   :  { %v1388_v40 = vpop.f32.mrf.mxu0  ;;  %v260_v59 = vadd.f32 %v259_v41, %v186_v37 }
  0xda   :  { %v1398_v43 = vpop.f32.mrf.mxu1 }
  0xdb   :  { %v189_v42 = vpop.f32.mrf.mxu0  ;;  %v271_v3 = vadd.f32 %v1398_v43, %v1388_v40 }
  0xdc   :  { %v262_v46 = vpop.f32.mrf.mxu1 }
  0xdd   :  { %v263_v62 = vadd.f32 %v262_v46, %v189_v42 }
  0xe1   :  { %v1407_v44 = vpop.f32.mrf.mxu0 }
  0xe2   :  { %v1417_v47 = vpop.f32.mrf.mxu1  ;;  %v381_v4 = vadd.f32 %v1407_v44, %v268_v61 }
  0xe3   :  { %v364_v45 = vpop.f32.mrf.mxu0 }
  0xe4   :  { %v474_v49 = vpop.f32.mrf.mxu1  ;;  %v379_v63 = vadd.f32 %v364_v45, %v260_v59  ;;  %v491_v9 = vadd.f32 %v1417_v47, %v381_v4 }
  0xe5   :  { %v1408_v48 = vpop.f32.mrf.mxu0 }
  0xe6   :  { %v1418_v52 = vpop.f32.mrf.mxu1  ;;  %v382_v6 = vadd.f32 %v1408_v48, %v271_v3  ;;  %v489_v7 = vadd.f32 %v474_v49, %v379_v63 }
  0xe7   :  { %v367_v51 = vpop.f32.mrf.mxu0 }
  0xe8   :  { %v477_v55 = vpop.f32.mrf.mxu1  ;;  %v380_v5 = vadd.f32 %v367_v51, %v263_v62  ;;  %v492_v14 = vadd.f32 %v1418_v52, %v382_v6 }
  0xea   :  { %v490_v10 = vadd.f32 %v477_v55, %v380_v5 }
  0xed   :  { %v1427_v53 = vpop.f32.mrf.mxu0 }
  0xee   :  { %v1437_v56 = vpop.f32.mrf.mxu1  ;;  %v600_v15 = vadd.f32 %v1427_v53, %v491_v9 }
  0xef   :  { %v583_v54 = vpop.f32.mrf.mxu0 }
  0xf0   :  { %v692_v58 = vpop.f32.mrf.mxu1  ;;  %v598_v11 = vadd.f32 %v583_v54, %v489_v7  ;;  %v709_v22 = vadd.f32 %v1437_v56, %v600_v15 }
  0xf1   :  { %v1428_v57 = vpop.f32.mrf.mxu0 }
  0xf2   :  { %v1438_v0 = vpop.f32.mrf.mxu1  ;;  %v601_v18 = vadd.f32 %v1428_v57, %v492_v14  ;;  %v707_v19 = vadd.f32 %v692_v58, %v598_v11 }
  0xf3   :  { %v586_v60 = vpop.f32.mrf.mxu0 }
  0xf4   :  { %v695_v8 = vpop.f32.mrf.mxu1  ;;  %v599_v16 = vadd.f32 %v586_v60, %v490_v10  ;;  %v710_v26 = vadd.f32 %v1438_v0, %v601_v18 }
  0xf6   :  { %v708_v23 = vadd.f32 %v695_v8, %v599_v16  ;;  %v1325_v16 = vld [vmem:[%s1803_s2] ss:$0 sm:$0xff] }
  0xf9   :  { %v1447_v2 = vpop.f32.mrf.mxu0 }
  0xfa   :  { %v1457_v12 = vpop.f32.mrf.mxu1  ;;  %v819_v27 = vadd.f32 %v1447_v2, %v709_v22 }
  0xfb   :  { %v802_v1 = vpop.f32.mrf.mxu0 }
  0xfc   :  { %v911_v17 = vpop.f32.mrf.mxu1  ;;  %v817_v24 = vadd.f32 %v802_v1, %v707_v19  ;;  %v928_v34 = vadd.f32 %v1457_v12, %v819_v27 }
  0xfd   :  { %v1448_v13 = vpop.f32.mrf.mxu0 }
  0xfe   :  { %v1458_v21 = vpop.f32.mrf.mxu1  ;;  %v820_v31 = vadd.f32 %v1448_v13, %v710_v26  ;;  %v926_v32 = vadd.f32 %v911_v17, %v817_v24 }
  0xff   :  { %v805_v20 = vpop.f32.mrf.mxu0 }
 0x100   :  { %v818_v28 = vadd.f32 %v805_v20, %v708_v23  ;;  %v914_v29 = vpop.f32.mrf.mxu1  ;;  %v929_v38 = vadd.f32 %v1458_v21, %v820_v31  ;;  %v1326_v21 = vld [vmem:[%s1804_s3] ss:$0 sm:$0xff] }
 0x102   :  { %v927_v35 = vadd.f32 %v914_v29, %v818_v28 }
 0x105   :  { %v1467_v25 = vpop.f32.mrf.mxu0 }
 0x106   :  { %v1037_v39 = vadd.f32 %v1467_v25, %v928_v34  ;;  %v1113_v34 = vld [vmem:[%s1805_s4] sm:$0xff] }
 0x107   :  { %v1020_v30 = vpop.f32.mrf.mxu0 }
 0x108   :  { %v1035_v36 = vadd.f32 %v1020_v30, %v926_v32  ;;  %v1043_v45 = vsel %vm1039_vm6, %v1037_v39, 0.0 }
 0x109   :  { %v1468_v33 = vpop.f32.mrf.mxu0 }
 0x10a   :  { %v1040_v41 = vsel %vm1039_vm6, %v1035_v36, 0.0  ;;  %v1038_v42 = vadd.f32 %v1468_v33, %v929_v38 }
 0x10b   :  { %v1023_v37 = vpop.f32.mrf.mxu0 }
 0x10c   :  { %v1036_v40 = vadd.f32 %v1023_v37, %v927_v35  ;;  %v1045_v47 = vsel %vm1039_vm6, %v1038_v42, 0.0  ;;  %v1114_v35 = vld [vmem:[%s1805_s4 + $0x8] sm:$0xff] }
 0x10e   :  { %v1041_v43 = vsel %vm1039_vm6, %v1036_v40, 0.0 }
 0x10f   :  { %v1042_v44 = vadd.f32 %v1041_v43, %v1040_v41 }
 0x111   :  { %v1044_v46 = vadd.f32 %v1043_v45, %v1042_v44 }
 0x113   :  { %v1046_v48 = vadd.f32 %v1045_v47, %v1044_v46 }
 0x115   :  { %v1047_v49 = vrot.slane %v1046_v48, 4 }
 0x117   :  { %v1048_v50 = vadd.f32 %v1047_v49, %v1046_v48 }
 0x119   :  { %v1049_v51 = vrot.slane %v1048_v50, 2 }
 0x11b   :  { %v1050_v52 = vadd.f32 %v1049_v51, %v1048_v50 }
 0x11d   :  { %v1051_v53 = vrot.slane %v1050_v52, 1 }
 0x11f   :  { %v1052_v54 = vadd.f32 %v1051_v53, %v1050_v52 }
 0x121   :  { %v1054_v55 = vmul.f32 0.03125, %v1052_v54 }
 0x123   :  { %v1055_v56 = vsub.f32 %v1035_v36, %v1054_v55  ;;  %v1056_v57 = vsub.f32 %v1036_v40, %v1054_v55  ;;  %v1057_v58 = vsub.f32 %v1037_v39, %v1054_v55  ;;  %v1058_v59 = vsub.f32 %v1038_v42, %v1054_v55 }
 0x125   :  { %v1059_v60 = vmul.f32 %v1055_v56, %v1055_v56  ;;  %v1060_v61 = vmul.f32 %v1056_v57, %v1056_v57  ;;  %v1061_v62 = vmul.f32 %v1057_v58, %v1057_v58  ;;  %v1062_v63 = vmul.f32 %v1058_v59, %v1058_v59 }
 0x127   :  { %v1063_v0 = vsel %vm1039_vm6, %v1059_v60, 0.0  ;;  %v1064_v2 = vsel %vm1039_vm6, %v1060_v61, 0.0  ;;  %v1066_v4 = vsel %vm1039_vm6, %v1061_v62, 0.0  ;;  %v1068_v1 = vsel %vm1039_vm6, %v1062_v63, 0.0  ;;  %v1213_v63 = vld [vmem:[#allocation3] sm:$0x3] }
 0x128   :  { %v1065_v3 = vadd.f32 %v1064_v2, %v1063_v0 }
 0x12a   :  { %v1067_v5 = vadd.f32 %v1066_v4, %v1065_v3  ;;  %v1328_v4 = vld [vmem:[#allocation4] ss:$0 sm:$0xff] }
 0x12c   :  { %v1069_v6 = vadd.f32 %v1068_v1, %v1067_v5 }
 0x12e   :  { %v1070_v7 = vrot.slane %v1069_v6, 4 }
 0x130   :  { %v1071_v8 = vadd.f32 %v1070_v7, %v1069_v6 }
 0x132   :  { %v1072_v9 = vrot.slane %v1071_v8, 2 }
 0x134   :  { %v1073_v10 = vadd.f32 %v1072_v9, %v1071_v8 }
 0x136   :  { %v1074_v11 = vrot.slane %v1073_v10, 1 }
 0x138   :  { %v1075_v12 = vadd.f32 %v1074_v11, %v1073_v10 }
 0x13a   :  { %v1076_v13 = vmul.f32 0.03125, %v1075_v12 }
 0x13c   :  { %v1077_v14 = vadd.f32 1e-05, %v1076_v13 }
 0x13e   :  { %1555 = vrsqrt.f32 %v1077_v14 }
 0x14b   :  { %v1556_v15 = vpop.eup %1555 }
 0x14c   :  { %v1079_v17 = vmul.f32 %v1556_v15, %v1055_v56  ;;  %v1080_v18 = vmul.f32 %v1556_v15, %v1056_v57  ;;  %v1081_v19 = vmul.f32 %v1556_v15, %v1057_v58  ;;  %v1082_v20 = vmul.f32 %v1556_v15, %v1058_v59 }
 0x14e   :  { %v1090_v22 = vmul.f32 %v1325_v16, %v1079_v17  ;;  %v1091_v23 = vmul.f32 %v1325_v16, %v1080_v18  ;;  %v1092_v24 = vmul.f32 %v1325_v16, %v1081_v19  ;;  %v1093_v25 = vmul.f32 %v1325_v16, %v1082_v20 }
 0x150   :  { %v1101_v26 = vadd.f32 %v1326_v21, %v1090_v22  ;;  %v1102_v27 = vadd.f32 %v1326_v21, %v1091_v23  ;;  %v1103_v28 = vadd.f32 %v1326_v21, %v1092_v24  ;;  %v1104_v29 = vadd.f32 %v1326_v21, %v1093_v25 }
 0x152   :  { %v1105_v30 = vmul.f32 0.2, %v1101_v26  ;;  %v1106_v31 = vmul.f32 0.2, %v1102_v27  ;;  %v1107_v32 = vmul.f32 0.2, %v1103_v28 }
 0x153   :  { %v1108_v33 = vmul.f32 0.2, %v1104_v29 }
 0x154   :  { %v1109_v36 = vmax.f32 %v1101_v26, %v1105_v30  ;;  %v1110_v37 = vmax.f32 %v1102_v27, %v1106_v31  ;;  %v1111_v38 = vmax.f32 %v1103_v28, %v1107_v32 }
 0x155   :  { %v1112_v39 = vmax.f32 %v1104_v29, %v1108_v33 }
 0x156   :  { %v1115_v40 = vmul.f32 %v1113_v34, %v1109_v36  ;;  %v1116_v41 = vmul.f32 %v1114_v35, %v1110_v37  ;;  %v1117_v42 = vmul.f32 %v1113_v34, %v1111_v38 }
 0x157   :  { %v1118_v43 = vmul.f32 %v1114_v35, %v1112_v39 }
 0x158   :  { %v1119_v44 = vsel %vm1039_vm6, %v1115_v40, 0.0  ;;  %v1120_v45 = vsel %vm1039_vm6, %v1116_v41, 0.0  ;;  %v1128_v46 = vsel %vm1039_vm6, %v1117_v42, 0.0 }
 0x159   :  { %v1121_v47 = vadd.f32 %v1120_v45, %v1119_v44  ;;  %v1129_v48 = vsel %vm1039_vm6, %v1118_v43, 0.0 }
 0x15a   :  { %v1130_v49 = vadd.f32 %v1129_v48, %v1128_v46 }
 0x15b   :  { %v1122_v50 = vrot.slane %v1121_v47, 4 }
 0x15c   :  { %v1131_v51 = vrot.slane %v1130_v49, 4 }
 0x15d   :  { %v1123_v52 = vadd.f32 %v1122_v50, %v1121_v47 }
 0x15e   :  { %v1132_v53 = vadd.f32 %v1131_v51, %v1130_v49 }
 0x15f   :  { %v1124_v54 = vrot.slane %v1123_v52, 2 }
 0x160   :  { %v1133_v55 = vrot.slane %v1132_v53, 2 }
 0x161   :  { %v1125_v56 = vadd.f32 %v1124_v54, %v1123_v52 }
 0x162   :  { %v1134_v57 = vadd.f32 %v1133_v55, %v1132_v53 }
 0x163   :  { %v1126_v58 = vrot.slane %v1125_v56, 1 }
 0x164   :  { %v1135_v59 = vrot.slane %v1134_v57, 1 }
 0x165   :  { %v1127_v60 = vadd.f32 %v1126_v58, %v1125_v56 }
 0x166   :  { %v1136_v61 = vadd.f32 %v1135_v59, %v1134_v57 }
 0x168   :  { %v1140_v62 = vsel %vm1139_vm7, %v1136_v61, %v1127_v60 }
 0x169   :  { %1478 = vmatmul.mubr.msk.f32.vlgmr.msra.gmra.mxu1 %vm1039_vm6, %v1140_v62 }
 0x229   :  { %v1209_v0 = vpop.f32.mrf.mxu1 }
 0x22a   :  { %v1214_v2 = vadd.f32 %v1213_v63, %v1209_v0 }
 0x22b   :  { %v1479_v3 = vpop.f32.mrf.mxu1 }
 0x22c   :  { %1216 = vst.msk [vmem:[#allocation3] sm:$0x3] %vm61_vm5, %v1214_v2 }
 0x233   :  { %v1220_v5 = vld [vmem:[#allocation3] sm:$0x3] }
 0x234   :  { %v1228_v1 = vadd.f32 %v1328_v4, %v1220_v5 }
 0x236   :  { %v1229_v6 = vsub.f32 0.0, %v1228_v1 }
 0x238   :  { %v1230_v7 = vmul.f32 1.442695, %v1229_v6 }
 0x23a   :  { %1557 = vpow2.f32 %v1230_v7 }
 0x247   :  { %v1558_v8 = vpop.eup %1557 }
 0x248   :  { %v1232_v9 = vadd.f32 1.0, %v1558_v8 }
 0x24a   :  { %1559 = vrcp.f32 %v1232_v9 }
 0x257   :  { %v1560_v10 = vpop.eup %1559 }
 0x258   :  { %1235 = vst.msk [vmem:[%s1806_s6] sm:$0x3] %vm61_vm5, %v1560_v10 }

</bundles_post_ra>
